<compile_context>
chip_gen: v7x
topology: tpu7x:2x2x1
jax: 0.10.0
libtpu: 0.0.40
codegen_flags: <defaults>
</compile_context>

<pallas_src>
import functools

import jax
import jax.numpy as jnp
from jax.experimental import pallas as pl
from jax.experimental.pallas import tpu as pltpu


def _fused_additive_attn_kernel(q_ref, val_ref, w_ref, b_ref, v_ref, o_ref,
                                *, num_layers, seq, feat):
    TB = q_ref.shape[0]          # batch tile
    S, D = seq, feat

    # ---------------- Layer 0: real (TB, S, D) query / values ---------------
    # Flatten batch+seq so each weight matmul presents TB*S rows to the MXU.
    q2 = q_ref[...].reshape(TB * S, D)
    v2 = val_ref[...].reshape(TB * S, D)
    v2_f32 = v2.astype(jnp.float32)

    # bf16 operands on the MXU, f32 accumulation.
    t1 = (jnp.dot(q2.astype(jnp.bfloat16), w_ref[0],
                  preferred_element_type=jnp.float32)
          + jnp.dot(v2.astype(jnp.bfloat16), w_ref[1],
                    preferred_element_type=jnp.float32))            # (TB*S, D)
    energy = jnp.tanh(t1 + b_ref[0].astype(jnp.float32))            # f32
    alpha = jnp.sum(energy * v_ref[0].astype(jnp.float32),
                    axis=-1, keepdims=True)                         # (TB*S, 1)
    out = jnp.sum((alpha * v2_f32).reshape(TB, S, D), axis=1)       # (TB, D)

    # ------- Layers >= 1: query == values == previous output (S == 1) -------
    # w_ref[l + 1] already holds W1_l^T + W2_l^T (precomputed in the wrapper),
    # so each layer is one matmul + a per-row scalar scale.  num_layers is a
    # small static constant -> Python unroll.
    for l in range(1, num_layers):
        t1 = jnp.dot(out.astype(jnp.bfloat16), w_ref[l + 1],
                     preferred_element_type=jnp.float32)             # (TB, D)
        energy = jnp.tanh(t1 + b_ref[l].astype(jnp.float32))
        alpha = jnp.sum(energy * v_ref[l].astype(jnp.float32),
                        axis=-1, keepdims=True)                      # (TB, 1)
        out = alpha * out

    o_ref[...] = out.astype(o_ref.dtype)


def prepare_params(params, mxu_dtype=jnp.bfloat16):
    """One-time packing of per-layer params into stacked kernel operands.

    Returns (wstack, bias, vrow):
      wstack : (L+1, D, D) mxu_dtype -- [W1_0^T, W2_0^T, W1_1^T+W2_1^T, ...]
      bias   : (L, 1, D)   float32
      vrow   : (L, 1, D)   float32
    Hoisted out of the per-call path so a jitted forward never re-builds the
    weight stack in HBM.
    """
    blocks = [params[0][0], params[0][1]] + [p[0] + p[1] for p in params[1:]]
    wstack = jnp.stack([b.astype(jnp.float32) for b in blocks]).astype(mxu_dtype)
    bias = jnp.stack([p[2] for p in params]).astype(jnp.float32)
    vrow = jnp.stack([p[3] for p in params]).astype(jnp.float32)
    return wstack, bias, vrow


def _pick_batch_tile(B, S, D):
    if B <= 8:
        return B                                  # one grid step for tiny batches
    # Double-buffered f32 (TB, S, D) query + values tiles; leave headroom for
    # the resident weight stack and kernel intermediates inside ~48 MiB.
    per_row_bytes = 2 * 2 * S * D * 4
    max_rows = max(8, (24 * 1024 * 1024) // per_row_bytes)
    return min(B, (max_rows // 8) * 8)            # keep the output tile 8-aligned


def additive_attention_model(query, values, packed_params):
    """Fused AdditiveAttentionModel forward: (B, S, D) x2 -> (B, 1, D)."""
    wstack, bias, vrow = packed_params
    B, S, D = query.shape
    assert values.shape == (B, S, D)
    L = bias.shape[0]
    assert wstack.shape == (L + 1, D, D)

    TB = _pick_batch_tile(B, S, D)
    nb = pl.cdiv(B, TB)

    def const_spec(shape):
        idx = lambda i: (0,) * len(shape)
        if nb > 1:
            # Never re-fetched across grid steps -> single-buffer to save VMEM.
            return pl.BlockSpec(shape, idx, pipeline_mode=pl.Buffered(1))
        return pl.BlockSpec(shape, idx)

    kernel = functools.partial(_fused_additive_attn_kernel,
                               num_layers=L, seq=S, feat=D)

    # Derived VMEM budget: weights + bias/v + double-buffered activation tiles
    # + output + elementwise intermediates, with 2x headroom (capped at 64 MiB
    # so it is valid on v7x as well as v5e/v6e).
    w_bytes = wstack.size * wstack.dtype.itemsize
    bv_bytes = (bias.size + vrow.size) * 4
    act_bytes = 2 * 2 * TB * S * D * 4
    out_bytes = 2 * TB * D * 4
    scratch_bytes = 6 * TB * S * D * 4
    need = w_bytes + 2 * bv_bytes + act_bytes + out_bytes + scratch_bytes
    vmem_limit = int(min(max(2 * need, 32 * 1024 * 1024), 64 * 1024 * 1024))
    # NOTE: if (L+1)*D^2 bf16 weights ever approach the v7x 64 MiB VMEM budget,
    # add a layer grid axis ("arbitrary") streaming wstack[l] while carrying
    # `out` in a VMEM scratch accumulator.

    flops = (4 * B * S * D * D + 6 * B * S * D
             + (L - 1) * (2 * B * D * D + 6 * B * D))
    transcendentals = B * S * D + (L - 1) * B * D
    bytes_accessed = 2 * B * S * D * 4 + w_bytes + bv_bytes + B * D * 4

    out2d = pl.pallas_call(
        kernel,
        out_shape=jax.ShapeDtypeStruct((B, D), query.dtype),
        grid=(nb,),
        in_specs=[
            pl.BlockSpec((TB, S, D), lambda i: (i, 0, 0)),   # query tile
            pl.BlockSpec((TB, S, D), lambda i: (i, 0, 0)),   # values tile
            const_spec((L + 1, D, D)),                       # weight stack (bf16)
            const_spec((L, 1, D)),                           # bias stack (f32)
            const_spec((L, 1, D)),                           # v stack (f32)
        ],
        out_specs=pl.BlockSpec((TB, D), lambda i: (i, 0)),
        compiler_params=pltpu.CompilerParams(
            dimension_semantics=("parallel",),               # megacore on v7x
            vmem_limit_bytes=vmem_limit,
        ),
        cost_estimate=pl.CostEstimate(
            flops=flops,
            transcendentals=transcendentals,
            bytes_accessed=bytes_accessed,
        ),
    )(query, values, wstack, bias, vrow)

    # Restore the module's (B, 1, D) output shape (metadata-only reshape).
    return out2d.reshape(B, 1, D)


def init_params(key, num_layers, D, dtype=jnp.float32):
    """Deterministic synthetic parameters (shapes from the module __init__)."""
    params = []
    for i in range(num_layers):
        k1, k2, k3, k4 = jax.random.split(jax.random.fold_in(key, i), 4)
        scale = 1.0 / jnp.sqrt(D)
        # nn.Linear weight is (out, in); we store the transpose for x @ W^T.
        w1t = jax.random.uniform(k1, (D, D), dtype, -1.0, 1.0) * scale
        w2t = jax.random.uniform(k2, (D, D), dtype, -1.0, 1.0) * scale
        # Module initializes bias to zeros; use small nonzero values here so
        # the bias-add path is actually exercised by the correctness check.
        bias_row = jax.random.uniform(k4, (1, D), dtype, -0.1, 0.1)
        v_row = jax.random.uniform(k3, (1, D), dtype, -1.0, 1.0) * scale
        params.append((w1t, w2t, bias_row, v_row))
    return params


def _reference_model(query, values, params):
    """Pure-JAX f32 reference matching the PyTorch semantics exactly."""
    out = None
    for (w1t, w2t, bias_row, v_row) in params:
        t1 = query @ w1t + values @ w2t                  # (B, S, D)
        energy = jnp.tanh(t1 + bias_row[None, :, :])     # bias (1, 1, D)
        alpha = energy @ v_row.T                         # (B, S, 1)
        out = jnp.swapaxes(alpha, 1, 2) @ values         # (B, 1, D)
        query = out
        values = out
    return out


if __name__ == "__main__":
    B, S, D = 2, 8, 32          # batch, seq_len, output_feature
    num_hubo_layers = 2

    key = jax.random.PRNGKey(0)
    kq, kv, kp = jax.random.split(key, 3)
    query = jax.random.normal(kq, (B, S, D), jnp.float32)
    values = jax.random.normal(kv, (B, S, D), jnp.float32)

    params = init_params(kp, num_hubo_layers, D)
    packed = prepare_params(params)          # one-time stacking + bf16 cast

    fwd = jax.jit(additive_attention_model)
    out = jax.block_until_ready(fwd(query, values, packed))

    ref = _reference_model(query, values, params)
    assert out.shape == (B, 1, D)
    # bf16 MXU operands (f32 accumulation) vs the f32 reference.
    max_err = float(jnp.max(jnp.abs(out - ref)))
    assert jnp.allclose(out, ref, atol=5e-2, rtol=5e-2), (
        f"mismatch vs reference: max abs err {max_err}")

    print("KERNEL_OK")
</pallas_src>

<mosaic_0001>
module attributes {stable_mosaic.version = 11 : i64} {
  func.func @_fused_additive_attn_kernel(%arg0: i32, %arg1: memref<2x8x32xf32, #tpu.memory_space<vmem>>, %arg2: memref<2x8x32xf32, #tpu.memory_space<vmem>>, %arg3: memref<3x32x32xbf16, #tpu.memory_space<vmem>>, %arg4: memref<2x1x32xf32, #tpu.memory_space<vmem>>, %arg5: memref<2x1x32xf32, #tpu.memory_space<vmem>>, %arg6: memref<2x32xf32, #tpu.memory_space<vmem>>) attributes {dimension_semantics = [#tpu.dimension_semantics<parallel>], iteration_bounds = array<i64: 1>, scalar_prefetch = 0 : i64, scratch_operands = 0 : i64, tpu.core_type = #tpu.core_type<tc>, window_params = [{transform_indices = @transform_0, window_bounds = array<i64: 2, 8, 32>}, {transform_indices = @transform_1, window_bounds = array<i64: 2, 8, 32>}, {pipeline_mode = #tpu.pipeline_mode<synchronous>, transform_indices = @transform_2, window_bounds = array<i64: 3, 32, 32>}, {pipeline_mode = #tpu.pipeline_mode<synchronous>, transform_indices = @transform_3, window_bounds = array<i64: 2, 1, 32>}, {pipeline_mode = #tpu.pipeline_mode<synchronous>, transform_indices = @transform_4, window_bounds = array<i64: 2, 1, 32>}, {transform_indices = @transform_5, window_bounds = array<i64: 2, 32>}]} {
    %c0 = arith.constant 0 : index
    %c0_0 = arith.constant 0 : index
    %c0_1 = arith.constant 0 : index
    %0 = vector.load %arg1[%c0, %c0_0, %c0_1] : memref<2x8x32xf32, #tpu.memory_space<vmem>>, vector<2x8x32xf32>
    %1 = vector.shape_cast %0 : vector<2x8x32xf32> to vector<16x32xf32>
    %c0_2 = arith.constant 0 : index
    %c0_3 = arith.constant 0 : index
    %c0_4 = arith.constant 0 : index
    %2 = vector.load %arg2[%c0_2, %c0_3, %c0_4] : memref<2x8x32xf32, #tpu.memory_space<vmem>>, vector<2x8x32xf32>
    %3 = vector.shape_cast %2 : vector<2x8x32xf32> to vector<16x32xf32>
    %4 = arith.truncf %1 : vector<16x32xf32> to vector<16x32xbf16>
    %c0_5 = arith.constant 0 : index
    %c0_6 = arith.constant 0 : index
    %c0_7 = arith.constant 0 : index
    %5 = vector.load %arg3[%c0_5, %c0_6, %c0_7] : memref<3x32x32xbf16, #tpu.memory_space<vmem>>, vector<1x32x32xbf16>
    %6 = vector.shape_cast %5 : vector<1x32x32xbf16> to vector<32x32xbf16>
    %cst = arith.constant dense<0.000000e+00> : vector<16x32xf32>
    %7 = tpu.matmul %4, %6, %cst {dimension_numbers = #tpu.dot_dimension_numbers<[1], [0], [0], [1], [0, 0, 1, 1], [], []>} : vector<16x32xbf16>, vector<32x32xbf16>, vector<16x32xf32> -> vector<16x32xf32>
    %8 = arith.truncf %3 : vector<16x32xf32> to vector<16x32xbf16>
    %c1 = arith.constant 1 : index
    %c0_8 = arith.constant 0 : index
    %c0_9 = arith.constant 0 : index
    %9 = vector.load %arg3[%c1, %c0_8, %c0_9] : memref<3x32x32xbf16, #tpu.memory_space<vmem>>, vector<1x32x32xbf16>
    %10 = vector.shape_cast %9 : vector<1x32x32xbf16> to vector<32x32xbf16>
    %cst_10 = arith.constant dense<0.000000e+00> : vector<16x32xf32>
    %11 = tpu.matmul %8, %10, %cst_10 {dimension_numbers = #tpu.dot_dimension_numbers<[1], [0], [0], [1], [0, 0, 1, 1], [], []>} : vector<16x32xbf16>, vector<32x32xbf16>, vector<16x32xf32> -> vector<16x32xf32>
    %12 = arith.addf %7, %11 : vector<16x32xf32>
    %c0_11 = arith.constant 0 : index
    %c0_12 = arith.constant 0 : index
    %c0_13 = arith.constant 0 : index
    %13 = vector.load %arg4[%c0_11, %c0_12, %c0_13] : memref<2x1x32xf32, #tpu.memory_space<vmem>>, vector<1x1x32xf32>
    %14 = vector.shape_cast %13 : vector<1x1x32xf32> to vector<1x32xf32>
    %15 = vector.broadcast %14 : vector<1x32xf32> to vector<16x32xf32>
    %16 = arith.addf %12, %15 : vector<16x32xf32>
    %17 = math.tanh %16 : vector<16x32xf32>
    %c0_14 = arith.constant 0 : index
    %c0_15 = arith.constant 0 : index
    %c0_16 = arith.constant 0 : index
    %18 = vector.load %arg5[%c0_14, %c0_15, %c0_16] : memref<2x1x32xf32, #tpu.memory_space<vmem>>, vector<1x1x32xf32>
    %19 = vector.shape_cast %18 : vector<1x1x32xf32> to vector<1x32xf32>
    %20 = vector.broadcast %19 : vector<1x32xf32> to vector<16x32xf32>
    %21 = arith.mulf %17, %20 : vector<16x32xf32>
    %cst_17 = arith.constant dense<0.000000e+00> : vector<16xf32>
    %22 = vector.multi_reduction <add>, %21, %cst_17 [1] : vector<16x32xf32> to vector<16xf32>
    %23 = vector.shape_cast %22 : vector<16xf32> to vector<16x1xf32>
    %24 = vector.broadcast %23 : vector<16x1xf32> to vector<16x32xf32>
    %25 = arith.mulf %24, %3 : vector<16x32xf32>
    %26 = vector.shape_cast %25 : vector<16x32xf32> to vector<2x8x32xf32>
    %cst_18 = arith.constant dense<0.000000e+00> : vector<2x32xf32>
    %27 = vector.multi_reduction <add>, %26, %cst_18 [1] : vector<2x8x32xf32> to vector<2x32xf32>
    %28 = arith.truncf %27 : vector<2x32xf32> to vector<2x32xbf16>
    %c2 = arith.constant 2 : index
    %c0_19 = arith.constant 0 : index
    %c0_20 = arith.constant 0 : index
    %29 = vector.load %arg3[%c2, %c0_19, %c0_20] : memref<3x32x32xbf16, #tpu.memory_space<vmem>>, vector<1x32x32xbf16>
    %30 = vector.shape_cast %29 : vector<1x32x32xbf16> to vector<32x32xbf16>
    %cst_21 = arith.constant dense<0.000000e+00> : vector<2x32xf32>
    %31 = tpu.matmul %28, %30, %cst_21 {dimension_numbers = #tpu.dot_dimension_numbers<[1], [0], [0], [1], [0, 0, 1, 1], [], []>} : vector<2x32xbf16>, vector<32x32xbf16>, vector<2x32xf32> -> vector<2x32xf32>
    %c1_22 = arith.constant 1 : index
    %c0_23 = arith.constant 0 : index
    %c0_24 = arith.constant 0 : index
    %32 = vector.load %arg4[%c1_22, %c0_23, %c0_24] : memref<2x1x32xf32, #tpu.memory_space<vmem>>, vector<1x1x32xf32>
    %33 = vector.shape_cast %32 : vector<1x1x32xf32> to vector<1x32xf32>
    %34 = vector.broadcast %33 : vector<1x32xf32> to vector<2x32xf32>
    %35 = arith.addf %31, %34 : vector<2x32xf32>
    %36 = math.tanh %35 : vector<2x32xf32>
    %c1_25 = arith.constant 1 : index
    %c0_26 = arith.constant 0 : index
    %c0_27 = arith.constant 0 : index
    %37 = vector.load %arg5[%c1_25, %c0_26, %c0_27] : memref<2x1x32xf32, #tpu.memory_space<vmem>>, vector<1x1x32xf32>
    %38 = vector.shape_cast %37 : vector<1x1x32xf32> to vector<1x32xf32>
    %39 = vector.broadcast %38 : vector<1x32xf32> to vector<2x32xf32>
    %40 = arith.mulf %36, %39 : vector<2x32xf32>
    %cst_28 = arith.constant dense<0.000000e+00> : vector<2xf32>
    %41 = vector.multi_reduction <add>, %40, %cst_28 [1] : vector<2x32xf32> to vector<2xf32>
    %42 = vector.shape_cast %41 : vector<2xf32> to vector<2x1xf32>
    %43 = vector.broadcast %42 : vector<2x1xf32> to vector<2x32xf32>
    %44 = arith.mulf %43, %27 : vector<2x32xf32>
    %c0_29 = arith.constant 0 : index
    %c0_30 = arith.constant 0 : index
    %45 = vector.load %arg6[%c0_29, %c0_30] : memref<2x32xf32, #tpu.memory_space<vmem>>, vector<2x32xf32>
    tpu.vector_store %arg6[%c0_29, %c0_30], %44 {strides = array<i32>} : memref<2x32xf32, #tpu.memory_space<vmem>>, vector<2x32xf32>,
    return
  }
  func.func @transform_0(%arg0: i32) -> (i32, i32, i32) {
    %c0_i32 = arith.constant 0 : i32
    %c0_i32_0 = arith.constant 0 : i32
    %c0_i32_1 = arith.constant 0 : i32
    return %arg0, %c0_i32, %c0_i32_0 : i32, i32, i32
  }
  func.func @transform_1(%arg0: i32) -> (i32, i32, i32) {
    %c0_i32 = arith.constant 0 : i32
    %c0_i32_0 = arith.constant 0 : i32
    %c0_i32_1 = arith.constant 0 : i32
    return %arg0, %c0_i32, %c0_i32_0 : i32, i32, i32
  }
  func.func @transform_2(%arg0: i32) -> (i32, i32, i32) {
    %c0_i32 = arith.constant 0 : i32
    %c0_i32_0 = arith.constant 0 : i32
    %c0_i32_1 = arith.constant 0 : i32
    %c0_i32_2 = arith.constant 0 : i32
    return %c0_i32, %c0_i32_0, %c0_i32_1 : i32, i32, i32
  }
  func.func @transform_3(%arg0: i32) -> (i32, i32, i32) {
    %c0_i32 = arith.constant 0 : i32
    %c0_i32_0 = arith.constant 0 : i32
    %c0_i32_1 = arith.constant 0 : i32
    %c0_i32_2 = arith.constant 0 : i32
    return %c0_i32, %c0_i32_0, %c0_i32_1 : i32, i32, i32
  }
  func.func @transform_4(%arg0: i32) -> (i32, i32, i32) {
    %c0_i32 = arith.constant 0 : i32
    %c0_i32_0 = arith.constant 0 : i32
    %c0_i32_1 = arith.constant 0 : i32
    %c0_i32_2 = arith.constant 0 : i32
    return %c0_i32, %c0_i32_0, %c0_i32_1 : i32, i32, i32
  }
  func.func @transform_5(%arg0: i32) -> (i32, i32) {
    %c0_i32 = arith.constant 0 : i32
    %c0_i32_0 = arith.constant 0 : i32
    return %arg0, %c0_i32 : i32, i32
  }
}

</mosaic_0001>

<bundles_post_ra>
// kernel: additive_attention_model.1
= control target key start
LH: loop header
LB: loop body
LE: loop exit
PB: predicated region body
PF: predicated region fallthrough
CT: control target
= control target key end

     0   :  { %10 = vsyncpa [#allocation3], 0  ;;  %s627_s0 = inlined_call_operand.hbm [shape: f32[2,8,32], index: 0, kind: input, shape index: {}]   ;;  %s628_s1 = inlined_call_operand.hbm [shape: f32[2,8,32], index: 1, kind: input, shape index: {}]   ;;  %s629_s2 = inlined_call_operand.hbm [shape: bf16[3,32,32], index: 2, kind: input, shape index: {}]   ;;  %s630_s3 = inlined_call_operand.vmem [shape: f32[2,1,32], index: 3, kind: input, shape index: {}]   ;;  %s631_s4 = inlined_call_operand.vmem [shape: f32[2,1,32], index: 4, kind: input, shape index: {}]   ;;  %s632_s5 = inlined_call_operand.hbm [shape: f32[2,32], index: 5, kind: output, shape index: {}]  }
   0x1   :  { %11 = vsyncpa [#allocation6], 0 }
   0x2   :  { %12 = vsyncpa [#allocation4], 0  ;;  %s510_s18 = smov [#allocation5]   ;;  %s511_s20 = smov [#allocation2]  }
   0x3   :  { %s30_s19 = sshll.u32 %s510_s18, 4  ;;  %s18_s21 = sshll.u32 %s511_s20, 4  ;;  %s31_s19 = int_to_ptr.vmem [resolvable:$true] %s30_s19  ;;  %s550_s21 = int_to_ptr.vmem [resolvable:$true] %s18_s21 }
   0x4   :  { %s416_s24 = scalar_lea.hbm %s628_s1, 256 }
   0x5   :  { %p417_p0 = scmp.ne.s32.totalorder %s628_s1, %s416_s24  ;;  %p420_p1 = scmp.lt.u32.totalorder %s416_s24, %s628_s1 }
   0x7   :  { %p422_p2 = pnand %p420_p1, %p417_p0 }
   0x9   :  { %425 = shalt.err (!%p422_p2)
}
   0xa   :  { %s426_s29 = scalar_lea.vmem %s31_s19, 256  ;;  %p431_p4 = scmp.lt.s32.totalorder %s31_s19, %s31_s19 }
   0xb   :  { %p427_p3 = scmp.ne.s32.totalorder %s31_s19, %s426_s29  ;;  %p432_p5 = scmp.lt.s32.totalorder %s426_s29, %s426_s29 }
   0xd   :  { %p433_p6 = por %p432_p5, %p431_p4 }
   0xf   :  { %p434_p7 = pnand %p433_p6, %p427_p3 }
  0x11   :  { %437 = shalt.err (!%p434_p7)
}
  0x12   :  { %s512_s30 = smov 128   ;;  %s513_s6 = smov 8  }
  0x13   :  { %36 = dma.hbm_to_vmem [thread:$0]  %s628_s1, 256, %s31_s19, [#allocation6], %s512_s30, %s512_s30, %s513_s6  }
  0x14   :  { %s438_s11 = scalar_lea.hbm %s627_s0, 256 }
  0x15   :  { %p439_p8 = scmp.ne.s32.totalorder %s627_s0, %s438_s11  ;;  %p442_p9 = scmp.lt.u32.totalorder %s438_s11, %s627_s0 }
  0x17   :  { %p444_p10 = pnand %p442_p9, %p439_p8 }
  0x19   :  { %447 = shalt.err (!%p444_p10)
}
  0x1a   :  { %s448_s16 = scalar_lea.vmem %s550_s21, 256  ;;  %p453_p12 = scmp.lt.s32.totalorder %s550_s21, %s550_s21 }
  0x1b   :  { %p449_p11 = scmp.ne.s32.totalorder %s550_s21, %s448_s16  ;;  %p454_p13 = scmp.lt.s32.totalorder %s448_s16, %s448_s16 }
  0x1d   :  { %p455_p0 = por %p454_p13, %p453_p12 }
  0x1f   :  { %p456_p1 = pnand %p455_p0, %p449_p11 }
  0x21   :  { %459 = shalt.err (!%p456_p1)
}
  0x22   :  { %24 = dma.hbm_to_vmem [thread:$0]  %s627_s0, 256, %s550_s21, [#allocation3], %s512_s30, %s512_s30, %s513_s6  }
  0x23   :  { %s514_s18 = smov [#allocation7]   ;;  %s460_s23 = scalar_lea.hbm %s629_s2, 768 }
  0x24   :  { %s42_s19 = sshll.u32 %s514_s18, 4  ;;  %p461_p2 = scmp.ne.s32.totalorder %s629_s2, %s460_s23  ;;  %s43_s19 = int_to_ptr.vmem [resolvable:$true] %s42_s19 }
  0x25   :  { %p464_p3 = scmp.lt.u32.totalorder %s460_s23, %s629_s2 }
  0x27   :  { %p466_p4 = pnand %p464_p3, %p461_p2 }
  0x29   :  { %469 = shalt.err (!%p466_p4)
}
  0x2a   :  { %s470_s28 = scalar_lea.vmem %s43_s19, 768  ;;  %p475_p6 = scmp.lt.s32.totalorder %s43_s19, %s43_s19 }
  0x2b   :  { %p471_p5 = scmp.ne.s32.totalorder %s43_s19, %s470_s28  ;;  %p476_p7 = scmp.lt.s32.totalorder %s470_s28, %s470_s28 }
  0x2d   :  { %p477_p8 = por %p476_p7, %p475_p6 }
  0x2f   :  { %p478_p9 = pnand %p477_p8, %p471_p5 }
  0x31   :  { %481 = shalt.err (!%p478_p9)
}
  0x32   :  { %s515_s0 = smov 64   ;;  %s516_s21 = smov 4  }
  0x33   :  { %48 = dma.hbm_to_vmem [thread:$0]  %s629_s2, 768, %s43_s19, [#allocation6], %s515_s0, %s515_s0, %s516_s21  }
  0x34   :  { %504 = dma.done.wait [#allocation3], 256  }
  0x35   :  { %505 = vsyncadd [#allocation3], 4294967040 }
  0x36   :  { %506 = dma.done.wait [#allocation6], 1024  }
  0x37   :  { %507 = vsyncadd [#allocation6], 4294966272  ;;  %v517_v0 = vmov 0.0   ;;  %vm518_vm0 = vmmov 0   ;;  %v404_v1 = vld [vmem:[#allocation7 + $0x10] sm:$0xff]   ;;  %v405_v2 = vld [vmem:[#allocation7] sm:$0xff]  }
  0x38   :  { %370 = vmatprep.subr.bf16.mxu0 %v517_v0  ;;  %378 = vmatprep.subr.bf16.mxu1 %v517_v0  ;;  %v406_v3 = vld [vmem:[#allocation7 + $0x18] sm:$0xff]   ;;  %v407_v4 = vld [vmem:[#allocation7 + $0x8] sm:$0xff]   ;;  %v65_v5 = vld [vmem:[#allocation5] sm:$0xff]  ;;  %vm90_vm1 = vcmask 261120   ;;  %vm252_vm2 = vcmask 1041409   ;;  %vm320_vm3 = vcmask 254976  }
  0x39   :  { %374 = vmatprep.mubr.msk.bf16.mxu0 %vm518_vm0, %v517_v0  ;;  %382 = vmatprep.mubr.msk.bf16.mxu1 %vm518_vm0, %v517_v0  ;;  %v66_v6 = vld [vmem:[#allocation5 + $0x8] sm:$0xff]  ;;  %v63_v7 = vld [vmem:[#allocation2] sm:$0xff]  ;;  %v64_v9 = vld [vmem:[#allocation2 + $0x8] sm:$0xff]  ;;  %s519_s13 = smov [#allocation8]  }
  0x3a   :  { %371 = vmatpush3.bf16.msra.mxu0 %v404_v1  ;;  %379 = vmatpush3.bf16.msra.mxu1 %v405_v2  ;;  %v72_v8 = vpack.c.bf16 %v66_v6, %v65_v5  ;;  %v67_v10 = vpack.c.bf16 %v64_v9, %v63_v7  ;;  %v352_v13 = vld [vmem:[%s630_s3] ss:$0 sm:$0xff]  ;;  %v409_v32 = vld [vmem:[#allocation7 + $0x28] sm:$0xff]   ;;  %v355_v58 = vld [vmem:[%s630_s3 + $0x1] ss:$0 sm:$0xff]  ;;  %s336_s14 = sshll.u32 %s519_s13, 4  ;;  %s337_s14 = int_to_ptr.vmem [resolvable:$true] %s336_s14 }
  0x3b   :  { %372 = vmatprep.subr.bf16.mxu0 %v517_v0  ;;  %380 = vmatprep.subr.bf16.mxu1 %v517_v0  ;;  %v353_v24 = vld [vmem:[%s631_s4] ss:$0 sm:$0xff]  ;;  %s482_s3 = scalar_lea.vmem %s337_s14, 32  ;;  %p487_p11 = scmp.lt.s32.totalorder %s337_s14, %s337_s14 }
  0x3c   :  { %v408_v31 = vld [vmem:[#allocation7 + $0x20] sm:$0xff]   ;;  %p483_p10 = scmp.ne.s32.totalorder %s337_s14, %s482_s3  ;;  %p488_p12 = scmp.lt.s32.totalorder %s482_s3, %s482_s3 }
  0x3e   :  { %373 = vmatpush3.bf16.msra.mxu0 %v406_v3  ;;  %381 = vmatpush3.bf16.msra.mxu1 %v407_v4  ;;  %p489_p13 = por %p488_p12, %p487_p11 }
  0x3f   :  { %386 = vmatprep.subr.bf16.mxu0 %v517_v0 }
  0x40   :  { %p490_p0 = pnand %p489_p13, %p483_p10 }
  0x41   :  { %375 = vmatmul.mubr.msk.bf16.vlgmr.msra.gmra.mrb[0].mxu0 %vm90_vm1, %v72_v8  ;;  %383 = vmatmul.mubr.msk.bf16.vlgmr.msra.gmra.mrb[0].mxu1 %vm90_vm1, %v67_v10 }
  0x42   :  { %390 = vmatprep.mubr.msk.bf16.mxu0 %vm518_vm0, %v517_v0  ;;  %387 = vmatpush3.bf16.msra.mxu0 %v408_v31 }
  0x43   :  { %388 = vmatprep.subr.bf16.mxu0 %v517_v0  ;;  %v360_v0 = vld [vmem:[%s631_s4 + $0x1] ss:$0 sm:$0xff] }
  0x46   :  { %389 = vmatpush3.bf16.msra.mxu0 %v409_v32 }
 0x114   :  { %v128_v11 = vpop.f32.mrb[0].mxu0  ;;  %v184_v12 = vpop.f32.mrb[0].mxu1 }
 0x115   :  { %v376_v14 = vpop.f32.mrb[1].mxu0  ;;  %v185_v15 = vadd.f32 %v184_v12, %v128_v11  ;;  %v384_v16 = vpop.f32.mrb[1].mxu1 }
 0x116   :  { %v131_v17 = vpop.f32.mrb[2].mxu0  ;;  %v187_v18 = vpop.f32.mrb[2].mxu1 }
 0x117   :  { %v377_v19 = vpop.f32.mrb[3].mxu0  ;;  %v198_v20 = vadd.f32 %v352_v13, %v185_v15  ;;  %v188_v21 = vadd.f32 %v187_v18, %v131_v17  ;;  %v385_v22 = vpop.f32.mrb[3].mxu1 }
 0x119   :  { %410 = vtanh.f32 %v198_v20  ;;  %v199_v23 = vadd.f32 %v352_v13, %v188_v21 }
 0x11b   :  { %412 = vtanh.f32 %v199_v23 }
 0x123   :  { %v411_v25 = vpop.eup %410 }
 0x124   :  { %v209_v26 = vmul.f32 %v411_v25, %v353_v24 }
 0x125   :  { %v413_v27 = vpop.eup %412 }
 0x126   :  { %v211_v28 = vsel %vm90_vm1, %v209_v26, 0.0  ;;  %v210_v29 = vmul.f32 %v413_v27, %v353_v24 }
 0x127   :  { %212 = vadd.xlane.f32.xlu0 %v211_v28 }
 0x128   :  { %v214_v30 = vsel %vm90_vm1, %v210_v29, 0.0 }
 0x12b   :  { %215 = vadd.xlane.f32.xlu0 %v214_v30 }
 0x1b4   :  { %v213_v33 = vpop.xlane.xlu0 %212 }
 0x1b5   :  { %v217_v34 = vmul.f32 %v213_v33, %v65_v5 }
 0x1b7   :  { %v219_v35 = vsel %vm90_vm1, %v217_v34, 0.0 }
 0x1b8   :  { %v220_v36 = vrot.slane %v219_v35, 4  ;;  %v216_v37 = vpop.xlane.xlu0 %215 }
 0x1b9   :  { %v218_v38 = vmul.f32 %v216_v37, %v66_v6 }
 0x1ba   :  { %v221_v39 = vadd.f32 %v220_v36, %v219_v35 }
 0x1bb   :  { %v226_v40 = vsel %vm90_vm1, %v218_v38, 0.0 }
 0x1bc   :  { %v222_v41 = vrot.slane %v221_v39, 2  ;;  %v227_v42 = vrot.slane %v226_v40, 4 }
 0x1be   :  { %v223_v43 = vadd.f32 %v222_v41, %v221_v39  ;;  %v228_v44 = vadd.f32 %v227_v42, %v226_v40 }
 0x1c0   :  { %v224_v45 = vrot.slane %v223_v43, 1  ;;  %v229_v46 = vrot.slane %v228_v44, 2 }
 0x1c2   :  { %v225_v47 = vadd.f32 %v224_v45, %v223_v43  ;;  %v230_v48 = vadd.f32 %v229_v46, %v228_v44 }
 0x1c4   :  { %v231_v49 = vrot.slane %v230_v48, 1  ;;  %v233_v50 = vpack.c.bf16 %v225_v47, %v225_v47 }
 0x1c6   :  { %v232_v51 = vadd.f32 %v231_v49, %v230_v48  ;;  %v250_v54 = vunpack.c.l.b16 %v233_v50 }
 0x1c8   :  { %v234_v52 = vpack.c.bf16 %v232_v51, %v232_v51  ;;  %v326_v53 = vsel %vm252_vm2, %v232_v51, %v225_v47 }
 0x1ca   :  { %v251_v55 = vunpack.c.l.b16 %v234_v52 }
 0x1cc   :  { %v253_v56 = vsel %vm252_vm2, %v251_v55, %v250_v54 }
 0x1cd   :  { %v254_v57 = vpack.c.b16 %v253_v56, %v253_v56 }
 0x1cf   :  { %391 = vmatmul.mubr.msk.bf16.vlgmr.msra.gmra.mrb[4].mxu0 %vm90_vm1, %v254_v57 }
 0x2a2   :  { %v304_v59 = vpop.f32.mrb[4].mxu0 }
 0x2a3   :  { %v305_v60 = vadd.f32 %v355_v58, %v304_v59  ;;  %v392_v61 = vpop.f32.mrb[5].mxu0 }
 0x2a4   :  { %v307_v62 = vpop.f32.mrb[6].mxu0 }
 0x2a5   :  { %414 = vtanh.f32 %v305_v60  ;;  %v393_v63 = vpop.f32.mrb[7].mxu0 }
 0x2af   :  { %v415_v1 = vpop.eup %414 }
 0x2b0   :  { %v319_v2 = vmul.f32 %v415_v1, %v360_v0 }
 0x2b2   :  { %v321_v3 = vsel %vm320_vm3, %v319_v2, 0.0 }
 0x2b3   :  { %322 = vadd.xlane.f32.xlu1 %v321_v3 }
 0x340   :  { %v323_v4 = vpop.xlane.xlu1 %322 }
 0x341   :  { %v328_v5 = vmul.f32 %v326_v53, %v323_v4 }
 0x343   :  { %329 = vst.msk [vmem:[#allocation8] sm:$0x3] %vm320_vm3, %v328_v5 }
 0x344   :  { %493 = shalt.err (!%p490_p0)
}
 0x345   :  { %s494_s16 = scalar_lea.hbm %s632_s5, 32 }
 0x346   :  { %p495_p1 = scmp.ne.s32.totalorder %s632_s5, %s494_s16  ;;  %p498_p2 = scmp.lt.u32.totalorder %s494_s16, %s632_s5 }
 0x348   :  { %p500_p3 = pnand %p498_p2, %p495_p1 }
 0x34a   :  { %503 = shalt.err (!%p500_p3)
}
 0x34b   :  { %339 = dma.vmem_to_hbm [thread:$0]  %s337_s14, 32, %s632_s5, [#allocation4]  }
 0x34c   :  { %508 = dma.done.wait [#allocation4], 32  }
 0x34d   :  { %509 = vsyncadd [#allocation4], 4294967264 }
 0x34e   :  { %343 = vsyncpa [#allocation3], 1 }
 0x34f   :  { %344 = vsyncpa [#allocation6], 1 }
 0x350   :  { %345 = vsyncpa [#allocation4], 1 }

</bundles_post_ra>
